<compile_context>
chip_gen: v7x
topology: tpu7x:2x2x1
jax: 0.10.0
libtpu: 0.0.40
codegen_flags: <defaults>
</compile_context>

<pallas_src>
import functools

import jax
import jax.numpy as jnp
from jax.experimental import pallas as pl
from jax.experimental.pallas import tpu as pltpu


def _round_up(x, m):
    return ((x + m - 1) // m) * m


def _fcnet_kernel(x_ref, w_ref, b_ref, o_ref, *, n_layers):
    """One grid step == one row tile: h <- ReLU(h @ W_l + b_l) for all layers."""
    h = x_ref[...].astype(jnp.float32)                 # (TN, P) f32 activation
    for l in range(n_layers):                          # static, fully unrolled
        y = jax.lax.dot_general(
            h.astype(jnp.bfloat16),                    # bf16 LHS -> full-rate MXU
            w_ref[l],                                  # (P, P) bf16, pre-transposed + pre-scaled
            dimension_numbers=(((1,), (0,)), ((), ())),  # canonical (M,K)x(K,N)
            preferred_element_type=jnp.float32)        # f32 accumulate
        h = jnp.maximum(y + b_ref[l], 0.0)             # bias + ReLU in f32
    o_ref[...] = h.astype(o_ref.dtype)


def fcnet_forward(x, params):
    """FCNet.forward: sequential [weight_norm(Linear, dim=None) -> ReLU], fused."""
    N, in_dim0 = x.shape
    L = len(params)
    feat_dims = [in_dim0] + [v.shape[0] for (v, _, _) in params]
    P = _round_up(max(feat_dims), 128)          # lane-dense feature width
    N_pad = _round_up(max(N, 8), 8)             # sublane-aligned rows (f32 I/O)

    # Row tiling: >=256 rows per tile when there are enough rows (amortizes the
    # latched weights / per-step overhead); otherwise one tile of all rows.
    TN = 256
    if N_pad < TN:
        TN = N_pad
    else:
        N_pad = _round_up(N_pad, TN)

    # All weights must fit resident in VMEM for this design (bf16).
    assert L * P * P * 2 <= 24 * 1024 * 1024, "weight stack too large for resident-VMEM path"

    # Pre-transpose, pre-scale (s = g / ||v||_F, dim=None => Frobenius norm),
    # zero-pad, cast to bf16.
    def prep_w(v, g):
        v = v.astype(jnp.float32)
        s = g / jnp.sqrt(jnp.sum(jnp.square(v)))
        wt = (s * v).T                                          # (in, out)
        wt = jnp.pad(wt, ((0, P - wt.shape[0]), (0, P - wt.shape[1])))
        return wt.astype(jnp.bfloat16)

    W = jnp.stack([prep_w(v, g) for (v, g, _) in params])       # (L, P, P) bf16
    B = jnp.stack([jnp.pad(b.astype(jnp.float32), (0, P - b.shape[0]))[None, :]
                   for (_, _, b) in params])                    # (L, 1, P) f32
    xp = jnp.pad(x, ((0, N_pad - N), (0, P - in_dim0)))         # (N_pad, P)

    out_padded = pl.pallas_call(
        functools.partial(_fcnet_kernel, n_layers=L),
        out_shape=jax.ShapeDtypeStruct((N_pad, P), x.dtype),
        grid=(N_pad // TN,),
        in_specs=[
            pl.BlockSpec((TN, P), lambda i: (i, 0)),            # row tile of x
            pl.BlockSpec((L, P, P), lambda i: (0, 0, 0)),       # ALL weights, resident
            pl.BlockSpec((L, 1, P), lambda i: (0, 0, 0)),       # ALL biases, resident
        ],
        out_specs=pl.BlockSpec((TN, P), lambda i: (i, 0)),
        compiler_params=pltpu.CompilerParams(
            dimension_semantics=("parallel",)),                 # row tiles independent
    )(xp, W, B)

    out_dim = params[-1][0].shape[0]
    return out_padded[:N, :out_dim]


def init_fcnet_params(key, dims):
    """nn.Linear default init + weight_norm(dim=None) init (g = ||v||_F, so w == v initially)."""
    params = []
    for i in range(len(dims) - 1):
        in_dim, out_dim = dims[i], dims[i + 1]
        key, k_v, k_b = jax.random.split(key, 3)
        bound = 1.0 / (in_dim ** 0.5)
        v = jax.random.uniform(k_v, (out_dim, in_dim), jnp.float32, -bound, bound)
        b = jax.random.uniform(k_b, (out_dim,), jnp.float32, -bound, bound)
        g = jnp.sqrt(jnp.sum(v * v))
        params.append((v, g, b))
    return params


def _reference_forward(x, params):
    """Pure-JAX f32 reference of the module semantics."""
    h = x
    for (v, g, b) in params:
        w = g * v / jnp.sqrt(jnp.sum(v * v))
        h = jnp.maximum(h @ w.T + b, 0.0)
    return h


if __name__ == "__main__":
    key = jax.random.PRNGKey(0)
    dims = [32, 64, 32]          # FCNet(dims=[32, 64, 32], act='ReLU', dropout=0)
    batch = 8

    key, k_x, k_p = jax.random.split(key, 3)
    x = jax.random.normal(k_x, (batch, dims[0]), jnp.float32)
    params = init_fcnet_params(k_p, dims)

    out = jax.block_until_ready(fcnet_forward(x, params))

    ref = _reference_forward(x, params)
    assert out.shape == (batch, dims[-1])
    # bf16 MXU operands -> loosen tolerance vs. the f32 reference.
    assert jnp.allclose(out, ref, atol=2e-2, rtol=2e-2), float(jnp.max(jnp.abs(out - ref)))

    print("KERNEL_OK")
</pallas_src>

<mosaic_0001>
module attributes {stable_mosaic.version = 11 : i64} {
  func.func @_fcnet_kernel(%arg0: i32, %arg1: memref<8x128xf32, #tpu.memory_space<vmem>>, %arg2: memref<2x128x128xbf16, #tpu.memory_space<vmem>>, %arg3: memref<2x1x128xf32, #tpu.memory_space<vmem>>, %arg4: memref<8x128xf32, #tpu.memory_space<vmem>>) attributes {dimension_semantics = [#tpu.dimension_semantics<parallel>], iteration_bounds = array<i64: 1>, scalar_prefetch = 0 : i64, scratch_operands = 0 : i64, tpu.core_type = #tpu.core_type<tc>, window_params = [{transform_indices = @transform_0, window_bounds = array<i64: 8, 128>}, {pipeline_mode = #tpu.pipeline_mode<synchronous>, transform_indices = @transform_1, window_bounds = array<i64: 2, 128, 128>}, {pipeline_mode = #tpu.pipeline_mode<synchronous>, transform_indices = @transform_2, window_bounds = array<i64: 2, 1, 128>}, {transform_indices = @transform_3, window_bounds = array<i64: 8, 128>}]} {
    %c0 = arith.constant 0 : index
    %c0_0 = arith.constant 0 : index
    %0 = vector.load %arg1[%c0, %c0_0] : memref<8x128xf32, #tpu.memory_space<vmem>>, vector<8x128xf32>
    %1 = arith.truncf %0 : vector<8x128xf32> to vector<8x128xbf16>
    %c0_1 = arith.constant 0 : index
    %c0_2 = arith.constant 0 : index
    %c0_3 = arith.constant 0 : index
    %2 = vector.load %arg2[%c0_1, %c0_2, %c0_3] : memref<2x128x128xbf16, #tpu.memory_space<vmem>>, vector<1x128x128xbf16>
    %3 = vector.shape_cast %2 : vector<1x128x128xbf16> to vector<128x128xbf16>
    %cst = arith.constant dense<0.000000e+00> : vector<8x128xf32>
    %4 = tpu.matmul %1, %3, %cst {dimension_numbers = #tpu.dot_dimension_numbers<[1], [0], [0], [1], [0, 0, 1, 1], [], []>} : vector<8x128xbf16>, vector<128x128xbf16>, vector<8x128xf32> -> vector<8x128xf32>
    %c0_4 = arith.constant 0 : index
    %c0_5 = arith.constant 0 : index
    %c0_6 = arith.constant 0 : index
    %5 = vector.load %arg3[%c0_4, %c0_5, %c0_6] : memref<2x1x128xf32, #tpu.memory_space<vmem>>, vector<1x1x128xf32>
    %6 = vector.shape_cast %5 : vector<1x1x128xf32> to vector<1x128xf32>
    %7 = vector.broadcast %6 : vector<1x128xf32> to vector<8x128xf32>
    %8 = arith.addf %4, %7 : vector<8x128xf32>
    %cst_7 = arith.constant 0.000000e+00 : f32
    %9 = vector.broadcast %cst_7 : f32 to vector<8x128xf32>
    %10 = arith.maximumf %8, %9 : vector<8x128xf32>
    %11 = arith.truncf %10 : vector<8x128xf32> to vector<8x128xbf16>
    %c1 = arith.constant 1 : index
    %c0_8 = arith.constant 0 : index
    %c0_9 = arith.constant 0 : index
    %12 = vector.load %arg2[%c1, %c0_8, %c0_9] : memref<2x128x128xbf16, #tpu.memory_space<vmem>>, vector<1x128x128xbf16>
    %13 = vector.shape_cast %12 : vector<1x128x128xbf16> to vector<128x128xbf16>
    %cst_10 = arith.constant dense<0.000000e+00> : vector<8x128xf32>
    %14 = tpu.matmul %11, %13, %cst_10 {dimension_numbers = #tpu.dot_dimension_numbers<[1], [0], [0], [1], [0, 0, 1, 1], [], []>} : vector<8x128xbf16>, vector<128x128xbf16>, vector<8x128xf32> -> vector<8x128xf32>
    %c1_11 = arith.constant 1 : index
    %c0_12 = arith.constant 0 : index
    %c0_13 = arith.constant 0 : index
    %15 = vector.load %arg3[%c1_11, %c0_12, %c0_13] : memref<2x1x128xf32, #tpu.memory_space<vmem>>, vector<1x1x128xf32>
    %16 = vector.shape_cast %15 : vector<1x1x128xf32> to vector<1x128xf32>
    %17 = vector.broadcast %16 : vector<1x128xf32> to vector<8x128xf32>
    %18 = arith.addf %14, %17 : vector<8x128xf32>
    %cst_14 = arith.constant 0.000000e+00 : f32
    %19 = vector.broadcast %cst_14 : f32 to vector<8x128xf32>
    %20 = arith.maximumf %18, %19 : vector<8x128xf32>
    %c0_15 = arith.constant 0 : index
    %c0_16 = arith.constant 0 : index
    %21 = vector.load %arg4[%c0_15, %c0_16] : memref<8x128xf32, #tpu.memory_space<vmem>>, vector<8x128xf32>
    tpu.vector_store %arg4[%c0_15, %c0_16], %20 {strides = array<i32>} : memref<8x128xf32, #tpu.memory_space<vmem>>, vector<8x128xf32>,
    return
  }
  func.func @transform_0(%arg0: i32) -> (i32, i32) {
    %c0_i32 = arith.constant 0 : i32
    %c0_i32_0 = arith.constant 0 : i32
    return %arg0, %c0_i32 : i32, i32
  }
  func.func @transform_1(%arg0: i32) -> (i32, i32, i32) {
    %c0_i32 = arith.constant 0 : i32
    %c0_i32_0 = arith.constant 0 : i32
    %c0_i32_1 = arith.constant 0 : i32
    %c0_i32_2 = arith.constant 0 : i32
    return %c0_i32, %c0_i32_0, %c0_i32_1 : i32, i32, i32
  }
  func.func @transform_2(%arg0: i32) -> (i32, i32, i32) {
    %c0_i32 = arith.constant 0 : i32
    %c0_i32_0 = arith.constant 0 : i32
    %c0_i32_1 = arith.constant 0 : i32
    %c0_i32_2 = arith.constant 0 : i32
    return %c0_i32, %c0_i32_0, %c0_i32_1 : i32, i32, i32
  }
  func.func @transform_3(%arg0: i32) -> (i32, i32) {
    %c0_i32 = arith.constant 0 : i32
    %c0_i32_0 = arith.constant 0 : i32
    return %arg0, %c0_i32 : i32, i32
  }
}

</mosaic_0001>

<bundles_post_ra>
// kernel: tpu_custom_call.1
= control target key start
LH: loop header
LB: loop body
LE: loop exit
PB: predicated region body
PF: predicated region fallthrough
CT: control target
= control target key end

     0   :  { %8 = vsyncpa [#allocation3], 0  ;;  %s536_s0 = inlined_call_operand.hbm [shape: f32[8,128], index: 0, kind: input, shape index: {}]   ;;  %s537_s1 = inlined_call_operand.hbm [shape: bf16[2,128,128], index: 1, kind: input, shape index: {}]   ;;  %s538_s2 = inlined_call_operand.vmem [shape: f32[2,1,128], index: 2, kind: input, shape index: {}]   ;;  %s539_s3 = inlined_call_operand.hbm [shape: f32[8,128], index: 3, kind: output, shape index: {}]  }
   0x1   :  { %9 = vsyncpa [#allocation6], 0 }
   0x2   :  { %10 = vsyncpa [#allocation4], 0  ;;  %s460_s12 = smov [#allocation2]   ;;  %s461_s14 = smov [#allocation5]  }
   0x3   :  { %s17_s13 = sshll.u32 %s460_s12, 4  ;;  %s26_s15 = sshll.u32 %s461_s14, 4  ;;  %s18_s13 = int_to_ptr.vmem [resolvable:$true] %s17_s13  ;;  %s487_s15 = int_to_ptr.vmem [resolvable:$true] %s26_s15 }
   0x4   :  { %s388_s18 = scalar_lea.hbm %s536_s0, 128 }
   0x5   :  { %p389_p0 = scmp.ne.s32.totalorder %s536_s0, %s388_s18  ;;  %p392_p1 = scmp.lt.u32.totalorder %s388_s18, %s536_s0 }
   0x7   :  { %p394_p2 = pnand %p392_p1, %p389_p0 }
   0x9   :  { %397 = shalt.err (!%p394_p2)
}
   0xa   :  { %s398_s23 = scalar_lea.vmem %s18_s13, 128  ;;  %p403_p4 = scmp.lt.s32.totalorder %s18_s13, %s18_s13 }
   0xb   :  { %p399_p3 = scmp.ne.s32.totalorder %s18_s13, %s398_s23  ;;  %p404_p5 = scmp.lt.s32.totalorder %s398_s23, %s398_s23 }
   0xd   :  { %p405_p6 = por %p404_p5, %p403_p4 }
   0xf   :  { %p406_p7 = pnand %p405_p6, %p399_p3 }
  0x11   :  { %409 = shalt.err (!%p406_p7)
}
  0x12   :  { %20 = dma.hbm_to_vmem [thread:$0]  %s536_s0, 128, %s18_s13, [#allocation3]  }
  0x13   :  { %s410_s28 = scalar_lea.hbm %s537_s1, 2048 }
  0x14   :  { %p411_p8 = scmp.ne.s32.totalorder %s537_s1, %s410_s28  ;;  %p414_p9 = scmp.lt.u32.totalorder %s410_s28, %s537_s1 }
  0x16   :  { %p416_p10 = pnand %p414_p9, %p411_p8 }
  0x18   :  { %419 = shalt.err (!%p416_p10)
}
  0x19   :  { %s420_s6 = scalar_lea.vmem %s487_s15, 2048  ;;  %p425_p12 = scmp.lt.s32.totalorder %s487_s15, %s487_s15 }
  0x1a   :  { %p421_p11 = scmp.ne.s32.totalorder %s487_s15, %s420_s6  ;;  %p426_p13 = scmp.lt.s32.totalorder %s420_s6, %s420_s6 }
  0x1c   :  { %p427_p0 = por %p426_p13, %p425_p12 }
  0x1e   :  { %p428_p1 = pnand %p427_p0, %p421_p11 }
  0x20   :  { %431 = shalt.err (!%p428_p1)
}
  0x21   :  { %s462_s0 = smov 64   ;;  %s463_s7 = smov 4  }
  0x22   :  { %32 = dma.hbm_to_vmem [thread:$0]  %s537_s1, 2048, %s487_s15, [#allocation6], %s462_s0, %s462_s0, %s463_s7  }
  0x23   :  { %454 = dma.done.wait [#allocation3], 128  }
  0x24   :  { %455 = vsyncadd [#allocation3], 4294967168 }
  0x25   :  { %456 = dma.done.wait [#allocation6], 2048  }
  0x26   :  { %457 = vsyncadd [#allocation6], 4294965248  ;;  %v464_v0 = vmov 0.0   ;;  %vm465_vm0 = vmmov 0   ;;  %v372_v1 = vld [vmem:[#allocation5] sm:$0xff]   ;;  %v373_v2 = vld [vmem:[#allocation5 + $0x8] sm:$0xff]  }
  0x27   :  { %325 = vmatprep.subr.bf16.mxu0 %v464_v0  ;;  %341 = vmatprep.mubr.msk.bf16.mxu0 %vm465_vm0, %v464_v0  ;;  %v374_v3 = vld [vmem:[#allocation5 + $0x10] sm:$0xff]   ;;  %v380_v4 = vld [vmem:[#allocation5 + $0x40] sm:$0xff]   ;;  %v375_v5 = vld [vmem:[#allocation5 + $0x18] sm:$0xff]   ;;  %s466_s13 = smov [#allocation7]  }
  0x28   :  { %345 = vmatprep.subr.bf16.mxu1 %v464_v0  ;;  %361 = vmatprep.mubr.msk.bf16.mxu1 %vm465_vm0, %v464_v0  ;;  %v381_v6 = vld [vmem:[#allocation5 + $0x48] sm:$0xff]   ;;  %v376_v7 = vld [vmem:[#allocation5 + $0x20] sm:$0xff]   ;;  %v382_v8 = vld [vmem:[#allocation5 + $0x50] sm:$0xff]   ;;  %s278_s14 = sshll.u32 %s466_s13, 4  ;;  %s279_s14 = int_to_ptr.vmem [resolvable:$true] %s278_s14 }
  0x29   :  { %326 = vmatpush3.bf16.msra.mxu0 %v372_v1  ;;  %346 = vmatpush3.bf16.msra.mxu1 %v380_v4  ;;  %v377_v9 = vld [vmem:[#allocation5 + $0x28] sm:$0xff]   ;;  %v383_v10 = vld [vmem:[#allocation5 + $0x58] sm:$0xff]   ;;  %v378_v11 = vld [vmem:[#allocation5 + $0x30] sm:$0xff]   ;;  %s432_s15 = scalar_lea.vmem %s279_s14, 128  ;;  %p437_p3 = scmp.lt.s32.totalorder %s279_s14, %s279_s14 }
  0x2a   :  { %327 = vmatprep.subr.bf16.mxu0 %v464_v0  ;;  %347 = vmatprep.subr.bf16.mxu1 %v464_v0  ;;  %v384_v12 = vld [vmem:[#allocation5 + $0x60] sm:$0xff]   ;;  %v379_v13 = vld [vmem:[#allocation5 + $0x38] sm:$0xff]   ;;  %v385_v15 = vld [vmem:[#allocation5 + $0x68] sm:$0xff]   ;;  %p433_p2 = scmp.ne.s32.totalorder %s279_s14, %s432_s15  ;;  %p438_p4 = scmp.lt.s32.totalorder %s432_s15, %s432_s15 }
  0x2b   :  { %v42_v14 = vld [vmem:[#allocation2] sm:$0xff]  ;;  %v386_v17 = vld [vmem:[#allocation5 + $0x70] sm:$0xff]  }
  0x2c   :  { %v43_v16 = vpack.c.bf16 %v42_v14, %v42_v14  ;;  %v387_v18 = vld [vmem:[#allocation5 + $0x78] sm:$0xff]   ;;  %p439_p5 = por %p438_p4, %p437_p3 }
  0x2d   :  { %328 = vmatpush3.bf16.msra.mxu0 %v373_v2  ;;  %348 = vmatpush3.bf16.msra.mxu1 %v381_v6  ;;  %v288_v19 = vld [vmem:[%s538_s2] ss:$0 sm:$0xff]  ;;  %v298_v27 = vld [vmem:[%s538_s2 + $0x1] ss:$0 sm:$0xff] }
  0x2e   :  { %329 = vmatprep.subr.bf16.mxu0 %v464_v0  ;;  %349 = vmatprep.subr.bf16.mxu1 %v464_v0  ;;  %p440_p6 = pnand %p439_p5, %p433_p2 }
  0x31   :  { %330 = vmatpush3.bf16.msra.mxu0 %v374_v3  ;;  %350 = vmatpush3.bf16.msra.mxu1 %v382_v8 }
  0x32   :  { %331 = vmatprep.subr.bf16.mxu0 %v464_v0  ;;  %351 = vmatprep.subr.bf16.mxu1 %v464_v0 }
  0x35   :  { %332 = vmatpush3.bf16.msra.mxu0 %v375_v5  ;;  %352 = vmatpush3.bf16.msra.mxu1 %v383_v10 }
  0x36   :  { %333 = vmatprep.subr.bf16.mxu0 %v464_v0  ;;  %353 = vmatprep.subr.bf16.mxu1 %v464_v0 }
  0x39   :  { %334 = vmatpush3.bf16.msra.mxu0 %v376_v7  ;;  %354 = vmatpush3.bf16.msra.mxu1 %v384_v12 }
  0x3a   :  { %335 = vmatprep.subr.bf16.mxu0 %v464_v0  ;;  %355 = vmatprep.subr.bf16.mxu1 %v464_v0 }
  0x3d   :  { %336 = vmatpush3.bf16.msra.mxu0 %v377_v9  ;;  %356 = vmatpush3.bf16.msra.mxu1 %v385_v15 }
  0x3e   :  { %337 = vmatprep.subr.bf16.mxu0 %v464_v0  ;;  %357 = vmatprep.subr.bf16.mxu1 %v464_v0 }
  0x41   :  { %338 = vmatpush3.bf16.msra.mxu0 %v378_v11  ;;  %358 = vmatpush3.bf16.msra.mxu1 %v386_v17 }
  0x42   :  { %339 = vmatprep.subr.bf16.mxu0 %v464_v0  ;;  %359 = vmatprep.subr.bf16.mxu1 %v464_v0 }
  0x45   :  { %340 = vmatpush3.bf16.msra.mxu0 %v379_v13  ;;  %360 = vmatpush3.bf16.msra.mxu1 %v387_v18 }
  0x48   :  { %342 = vmatmul.mubr.bf16.vlgmr.msra.gmra.mrb[0].mxu0 %v43_v16 }
 0x11b   :  { %v149_v20 = vpop.f32.mrb[0].mxu0 }
 0x11c   :  { %v150_v21 = vadd.f32 %v288_v19, %v149_v20  ;;  %v343_v22 = vpop.f32.mrb[1].mxu0 }
 0x11d   :  { %v152_v23 = vpop.f32.mrb[2].mxu0 }
 0x11e   :  { %v155_v24 = vmax.f32 %v150_v21, 0.0  ;;  %v344_v25 = vpop.f32.mrb[3].mxu0 }
 0x120   :  { %v156_v26 = vpack.c.bf16 %v155_v24, %v155_v24 }
 0x122   :  { %362 = vmatmul.mubr.bf16.vlgmr.msra.gmra.mrb[0].mxu1 %v156_v26 }
 0x1f5   :  { %v264_v28 = vpop.f32.mrb[0].mxu1 }
 0x1f6   :  { %v265_v29 = vadd.f32 %v298_v27, %v264_v28  ;;  %v363_v30 = vpop.f32.mrb[1].mxu1 }
 0x1f7   :  { %v267_v31 = vpop.f32.mrb[2].mxu1 }
 0x1f8   :  { %v270_v32 = vmax.f32 %v265_v29, 0.0  ;;  %v364_v33 = vpop.f32.mrb[3].mxu1 }
 0x1fa   :  { %271 = vst [vmem:[#allocation7] sm:$0xff] %v270_v32 }
 0x1fb   :  { %443 = shalt.err (!%p440_p6)
}
 0x1fc   :  { %s444_s2 = scalar_lea.hbm %s539_s3, 128 }
 0x1fd   :  { %p445_p7 = scmp.ne.s32.totalorder %s539_s3, %s444_s2  ;;  %p448_p8 = scmp.lt.u32.totalorder %s444_s2, %s539_s3 }
 0x1ff   :  { %p450_p9 = pnand %p448_p8, %p445_p7 }
 0x201   :  { %453 = shalt.err (!%p450_p9)
}
 0x202   :  { %281 = dma.vmem_to_hbm [thread:$0]  %s279_s14, 128, %s539_s3, [#allocation4]  }
 0x203   :  { %458 = dma.done.wait [#allocation4], 128  }
 0x204   :  { %459 = vsyncadd [#allocation4], 4294967168 }
 0x205   :  { %285 = vsyncpa [#allocation3], 1 }
 0x206   :  { %286 = vsyncpa [#allocation6], 1 }
 0x207   :  { %287 = vsyncpa [#allocation4], 1 }

</bundles_post_ra>
